<compile_context>
chip_gen: v7x
topology: tpu7x:2x2x1
jax: 0.10.0
libtpu: 0.0.40
codegen_flags: <defaults>
</compile_context>

<pallas_src>
import functools
import math

import jax
import jax.numpy as jnp
from jax.experimental import pallas as pl
from jax.experimental.pallas import tpu as pltpu

SMOOTH = 1.0
CLASS_WEIGHTS = (1.0, 1.0, 2.0)

LANE = 128          # vreg lane width
SUB = 8             # vreg sublane count (f32)
MAX_TILE_R = 4096   # rows of 128 lanes per block: 2 MiB f32 per input block
VMEM_LIMIT_BYTES = 48 * 1024 * 1024  # < 64 MiB (v7x physical); plenty on v5e/v6e


def _dice_partial_kernel(pred_ref, targ_ref, inter_ref, pt_ref, *,
                         rows_total, tile_r, need_mask):
    # pred_ref/targ_ref: (1, tile_r, 128) streaming blocks for one (b, c) row.
    # inter_ref/pt_ref:  (1, 8, 128) per-(b,c) partial sums, resident across
    #                    the row-tile ("arbitrary") grid axis.
    j = pl.program_id(1)

    @pl.when(j == 0)
    def _():
        inter_ref[...] = jnp.zeros_like(inter_ref)
        pt_ref[...] = jnp.zeros_like(pt_ref)

    p = pred_ref[0].astype(jnp.float32)      # (tile_r, 128)
    t = targ_ref[0].astype(jnp.float32)      # (tile_r, 128)

    if need_mask:
        # Last row-tile is partial: zero the out-of-range sublane rows before
        # any arithmetic (Pallas block padding is unspecified data).
        valid = rows_total - j * tile_r      # scalar; >= tile_r except last j
        row_idx = jax.lax.broadcasted_iota(jnp.int32, (tile_r, LANE), 0)
        keep = row_idx < valid
        p = jnp.where(keep, p, 0.0)
        t = jnp.where(keep, t, 0.0)

    groups = tile_r // SUB
    # Vreg-wise VALU accumulation: reduce over the leading (vreg-group) axis
    # only; the (8, 128) accumulator is collapsed once in the wrapper.
    inter_ref[0] += jnp.sum((p * t).reshape(groups, SUB, LANE), axis=0)
    pt_ref[0] += jnp.sum((p + t).reshape(groups, SUB, LANE), axis=0)


def multi_label_dice_loss(pred, target, *, smooth=SMOOTH,
                          class_weights=CLASS_WEIGHTS):
    """pred, target: [B, C, D, H, W] with C == len(class_weights)."""
    assert pred.shape == target.shape
    B, C = pred.shape[0], pred.shape[1]
    assert C == len(class_weights)
    BC = B * C
    dhw = math.prod(pred.shape[2:])

    x = pred.reshape(BC, dhw)        # zero-cost reshapes, keep input dtype
    y = target.reshape(BC, dhw)

    rows = pl.cdiv(dhw, LANE)
    if dhw % LANE != 0 or rows < SUB:
        # TODO(synk): ragged lane tail (dhw % 128 != 0) or tiny volume — fall
        # back to a zero-pad copy (zeros are exact for dice sums). Avoiding
        # this copy would need a manual-DMA (pl.ANY) path; not worth it here.
        padded = pl.cdiv(dhw, SUB * LANE) * SUB * LANE
        x = jnp.pad(x, ((0, 0), (0, padded - dhw)))
        y = jnp.pad(y, ((0, 0), (0, padded - dhw)))
        rows = padded // LANE

    x3 = x.reshape(BC, rows, LANE)
    y3 = y.reshape(BC, rows, LANE)

    tile_r = min(MAX_TILE_R, (rows // SUB) * SUB)   # multiple of 8, <= rows
    num_tiles = pl.cdiv(rows, tile_r)
    need_mask = (rows % tile_r) != 0                # mask ragged last tile

    kernel = functools.partial(_dice_partial_kernel, rows_total=rows,
                               tile_r=tile_r, need_mask=need_mask)

    bytes_accessed = (x3.size * x3.dtype.itemsize
                      + y3.size * y3.dtype.itemsize
                      + 2 * BC * SUB * LANE * 4)

    inter_p, pt_p = pl.pallas_call(
        kernel,
        out_shape=(
            jax.ShapeDtypeStruct((BC, SUB, LANE), jnp.float32),
            jax.ShapeDtypeStruct((BC, SUB, LANE), jnp.float32),
        ),
        grid_spec=pltpu.PrefetchScalarGridSpec(
            num_scalar_prefetch=0,
            grid=(BC, num_tiles),
            in_specs=[
                pl.BlockSpec((1, tile_r, LANE), lambda i, j: (i, j, 0)),
                pl.BlockSpec((1, tile_r, LANE), lambda i, j: (i, j, 0)),
            ],
            out_specs=(
                pl.BlockSpec((1, SUB, LANE), lambda i, j: (i, 0, 0)),
                pl.BlockSpec((1, SUB, LANE), lambda i, j: (i, 0, 0)),
            ),
        ),
        compiler_params=pltpu.CompilerParams(
            dimension_semantics=("parallel", "arbitrary"),
            vmem_limit_bytes=VMEM_LIMIT_BYTES),
        cost_estimate=pl.CostEstimate(
            flops=4 * int(pred.size),
            transcendentals=0,
            bytes_accessed=int(bytes_accessed)),
    )(x3, y3)

    # Tiny epilogue in the wrapper: collapse the (8, 128) accumulators, fold
    # batches, and apply the dice formula + class weights (kept out of the
    # kernel so no array constants are captured).
    inter = jnp.sum(inter_p.reshape(B, C, SUB * LANE), axis=(0, 2))   # (C,)
    pt = jnp.sum(pt_p.reshape(B, C, SUB * LANE), axis=(0, 2))         # (C,)
    dice = (2.0 * inter + smooth) / (pt + smooth)
    w = jnp.asarray(class_weights, jnp.float32)
    return jnp.sum(w * (1.0 - dice)) / jnp.sum(w)


def _reference(pred, target, smooth=SMOOTH, class_weights=CLASS_WEIGHTS):
    total = 0.0
    for i, w in enumerate(class_weights):
        p = pred[:, i].reshape(-1).astype(jnp.float32)
        t = target[:, i].reshape(-1).astype(jnp.float32)
        inter = jnp.sum(p * t)
        dice = (2.0 * inter + smooth) / (jnp.sum(p) + jnp.sum(t) + smooth)
        total = total + w * (1.0 - dice)
    return total / sum(class_weights)


if __name__ == "__main__":
    key = jax.random.PRNGKey(0)
    k1, k2 = jax.random.split(key)
    # dhw = 5*16*16 = 1280 -> 10 lane-rows: exercises the in-kernel ragged-tile
    # mask (tile_r = 8, last tile has only 2 valid rows) with zero padding copies.
    B, C, D, H, W = 2, 3, 5, 16, 16
    pred = jax.nn.sigmoid(jax.random.normal(k1, (B, C, D, H, W), jnp.float32))
    target = (jax.random.uniform(k2, (B, C, D, H, W)) > 0.5).astype(jnp.float32)

    loss = jax.block_until_ready(multi_label_dice_loss(pred, target))
    ref = jax.block_until_ready(_reference(pred, target))
    assert jnp.allclose(loss, ref, atol=1e-5, rtol=1e-5), (loss, ref)
    print("KERNEL_OK")
</pallas_src>

<mosaic_0001>
module attributes {stable_mosaic.version = 11 : i64} {
  func.func @_dice_partial_kernel(%arg0: i32, %arg1: i32, %arg2: memref<1x8x128xf32, #tpu.memory_space<vmem>>, %arg3: memref<1x8x128xf32, #tpu.memory_space<vmem>>, %arg4: memref<1x8x128xf32, #tpu.memory_space<vmem>>, %arg5: memref<1x8x128xf32, #tpu.memory_space<vmem>>) attributes {dimension_semantics = [#tpu.dimension_semantics<parallel>, #tpu.dimension_semantics<arbitrary>], iteration_bounds = array<i64: 6, 2>, scalar_prefetch = 0 : i64, scratch_operands = 0 : i64, tpu.core_type = #tpu.core_type<tc>, window_params = [{transform_indices = @transform_0, window_bounds = array<i64: 1, 8, 128>}, {transform_indices = @transform_1, window_bounds = array<i64: 1, 8, 128>}, {transform_indices = @transform_2, window_bounds = array<i64: 1, 8, 128>}, {transform_indices = @transform_3, window_bounds = array<i64: 1, 8, 128>}]} {
    %c0_i32 = arith.constant 0 : i32
    %0 = arith.cmpi eq, %arg1, %c0_i32 : i32
    %1 = arith.extui %0 : i1 to i32
    %c0_i32_0 = arith.constant 0 : i32
    %2 = arith.cmpi ne, %1, %c0_i32_0 : i32
    scf.if %2 {
      %cst_21 = arith.constant 0.000000e+00 : f32
      %34 = vector.broadcast %cst_21 : f32 to vector<1x8x128xf32>
      %c0_22 = arith.constant 0 : index
      %c0_23 = arith.constant 0 : index
      %c0_24 = arith.constant 0 : index
      %35 = vector.load %arg4[%c0_22, %c0_23, %c0_24] : memref<1x8x128xf32, #tpu.memory_space<vmem>>, vector<1x8x128xf32>
      tpu.vector_store %arg4[%c0_22, %c0_23, %c0_24], %34 {strides = array<i32>} : memref<1x8x128xf32, #tpu.memory_space<vmem>>, vector<1x8x128xf32>,
      %cst_25 = arith.constant 0.000000e+00 : f32
      %36 = vector.broadcast %cst_25 : f32 to vector<1x8x128xf32>
      %c0_26 = arith.constant 0 : index
      %c0_27 = arith.constant 0 : index
      %c0_28 = arith.constant 0 : index
      %37 = vector.load %arg5[%c0_26, %c0_27, %c0_28] : memref<1x8x128xf32, #tpu.memory_space<vmem>>, vector<1x8x128xf32>
      tpu.vector_store %arg5[%c0_26, %c0_27, %c0_28], %36 {strides = array<i32>} : memref<1x8x128xf32, #tpu.memory_space<vmem>>, vector<1x8x128xf32>,
    } else {
    }
    %c0 = arith.constant 0 : index
    %c0_1 = arith.constant 0 : index
    %c0_2 = arith.constant 0 : index
    %3 = vector.load %arg2[%c0, %c0_1, %c0_2] : memref<1x8x128xf32, #tpu.memory_space<vmem>>, vector<1x8x128xf32>
    %4 = vector.shape_cast %3 : vector<1x8x128xf32> to vector<8x128xf32>
    %c0_3 = arith.constant 0 : index
    %c0_4 = arith.constant 0 : index
    %c0_5 = arith.constant 0 : index
    %5 = vector.load %arg3[%c0_3, %c0_4, %c0_5] : memref<1x8x128xf32, #tpu.memory_space<vmem>>, vector<1x8x128xf32>
    %6 = vector.shape_cast %5 : vector<1x8x128xf32> to vector<8x128xf32>
    %c8_i32 = arith.constant 8 : i32
    %7 = arith.muli %arg1, %c8_i32 : i32
    %c10_i32 = arith.constant 10 : i32
    %8 = arith.subi %c10_i32, %7 : i32
    %9 = tpu.iota {dimensions = array<i32: 0>} : vector<8x128xi32>
    %10 = vector.broadcast %8 : i32 to vector<8x128xi32>
    %11 = arith.cmpi slt, %9, %10 : vector<8x128xi32>
    %cst = arith.constant 0.000000e+00 : f32
    %12 = vector.broadcast %cst : f32 to vector<8x128xf32>
    %13 = arith.select %11, %4, %12 : vector<8x128xi1>, vector<8x128xf32>
    %cst_6 = arith.constant 0.000000e+00 : f32
    %14 = vector.broadcast %cst_6 : f32 to vector<8x128xf32>
    %15 = arith.select %11, %6, %14 : vector<8x128xi1>, vector<8x128xf32>
    %c0_7 = arith.constant 0 : index
    %c0_8 = arith.constant 0 : index
    %c0_9 = arith.constant 0 : index
    %16 = vector.load %arg4[%c0_7, %c0_8, %c0_9] : memref<1x8x128xf32, #tpu.memory_space<vmem>>, vector<1x8x128xf32>
    %17 = vector.shape_cast %16 : vector<1x8x128xf32> to vector<8x128xf32>
    %18 = arith.mulf %13, %15 : vector<8x128xf32>
    %19 = vector.shape_cast %18 : vector<8x128xf32> to vector<1x8x128xf32>
    %cst_10 = arith.constant dense<0.000000e+00> : vector<8x128xf32>
    %20 = vector.multi_reduction <add>, %19, %cst_10 [0] : vector<1x8x128xf32> to vector<8x128xf32>
    %21 = arith.addf %17, %20 : vector<8x128xf32>
    %c0_11 = arith.constant 0 : index
    %c0_12 = arith.constant 0 : index
    %c0_13 = arith.constant 0 : index
    %22 = vector.load %arg4[%c0_11, %c0_12, %c0_13] : memref<1x8x128xf32, #tpu.memory_space<vmem>>, vector<1x8x128xf32>
    %23 = vector.shape_cast %22 : vector<1x8x128xf32> to vector<8x128xf32>
    %24 = vector.shape_cast %21 : vector<8x128xf32> to vector<1x8x128xf32>
    tpu.vector_store %arg4[%c0_11, %c0_12, %c0_13], %24 {strides = array<i32>} : memref<1x8x128xf32, #tpu.memory_space<vmem>>, vector<1x8x128xf32>,
    %c0_14 = arith.constant 0 : index
    %c0_15 = arith.constant 0 : index
    %c0_16 = arith.constant 0 : index
    %25 = vector.load %arg5[%c0_14, %c0_15, %c0_16] : memref<1x8x128xf32, #tpu.memory_space<vmem>>, vector<1x8x128xf32>
    %26 = vector.shape_cast %25 : vector<1x8x128xf32> to vector<8x128xf32>
    %27 = arith.addf %13, %15 : vector<8x128xf32>
    %28 = vector.shape_cast %27 : vector<8x128xf32> to vector<1x8x128xf32>
    %cst_17 = arith.constant dense<0.000000e+00> : vector<8x128xf32>
    %29 = vector.multi_reduction <add>, %28, %cst_17 [0] : vector<1x8x128xf32> to vector<8x128xf32>
    %30 = arith.addf %26, %29 : vector<8x128xf32>
    %c0_18 = arith.constant 0 : index
    %c0_19 = arith.constant 0 : index
    %c0_20 = arith.constant 0 : index
    %31 = vector.load %arg5[%c0_18, %c0_19, %c0_20] : memref<1x8x128xf32, #tpu.memory_space<vmem>>, vector<1x8x128xf32>
    %32 = vector.shape_cast %31 : vector<1x8x128xf32> to vector<8x128xf32>
    %33 = vector.shape_cast %30 : vector<8x128xf32> to vector<1x8x128xf32>
    tpu.vector_store %arg5[%c0_18, %c0_19, %c0_20], %33 {strides = array<i32>} : memref<1x8x128xf32, #tpu.memory_space<vmem>>, vector<1x8x128xf32>,
    return
  }
  func.func @transform_0(%arg0: i32, %arg1: i32) -> (i32, i32, i32) {
    %c0_i32 = arith.constant 0 : i32
    %c0_i32_0 = arith.constant 0 : i32
    return %arg0, %arg1, %c0_i32 : i32, i32, i32
  }
  func.func @transform_1(%arg0: i32, %arg1: i32) -> (i32, i32, i32) {
    %c0_i32 = arith.constant 0 : i32
    %c0_i32_0 = arith.constant 0 : i32
    return %arg0, %arg1, %c0_i32 : i32, i32, i32
  }
  func.func @transform_2(%arg0: i32, %arg1: i32) -> (i32, i32, i32) {
    %c0_i32 = arith.constant 0 : i32
    %c0_i32_0 = arith.constant 0 : i32
    %c0_i32_1 = arith.constant 0 : i32
    return %arg0, %c0_i32, %c0_i32_0 : i32, i32, i32
  }
  func.func @transform_3(%arg0: i32, %arg1: i32) -> (i32, i32, i32) {
    %c0_i32 = arith.constant 0 : i32
    %c0_i32_0 = arith.constant 0 : i32
    %c0_i32_1 = arith.constant 0 : i32
    return %arg0, %c0_i32, %c0_i32_0 : i32, i32, i32
  }
}

</mosaic_0001>

<bundles_post_ra>
// kernel: tpu_custom_call.1
= control target key start
LH: loop header
LB: loop body
LE: loop exit
PB: predicated region body
PF: predicated region fallthrough
CT: control target
= control target key end

     0   :  { %9 = vsyncpa [#allocation3], 0  ;;  %s849_s0 = inlined_call_operand.vmem [shape: f32[6,10,128], index: 0, kind: input, shape index: {}]   ;;  %s850_s1 = inlined_call_operand.vmem [shape: f32[6,10,128], index: 1, kind: input, shape index: {}]   ;;  %s851_s2 = inlined_call_operand.hbm [shape: f32[6,8,128], index: 2, kind: output, shape index: {0}]   ;;  %s852_s3 = inlined_call_operand.hbm [shape: f32[6,8,128], index: 3, kind: output, shape index: {1}]  }
   0x1   :  { %11 = vsyncpa [#allocation3 + $0x1], 0 }
   0x2   :  { %12 = vsyncpa [#allocation5], 0 }
   0x3   :  { %14 = vsyncpa [#allocation5 + $0x1], 0  ;;  %s665_s12 = smov 0   ;;  %s667_s13 = smov 0  }
   0x4   :  { %s669_s14 = smov 0   ;;  %s671_s15 = smov 0  }
   0x5   :  { %s673_s16 = smov 0   ;;  %s675_s17 = smov 0  }
   0x6   :  { %s677_s18 = smov 0   ;;  %s679_s19 = smov 0  }
   0x7 LB: > { %s418_s20 = sadd.s32 4294967295, %s640_s19   ;;  %s419_s21 = sadd.s32 4294967294, %s640_s19   ;;  %s640_s19 = sphi %s679_s19, %s20_s19   ;;  %s636_s18 = sphi %s677_s18, %s864_s18   ;;  %s632_s17 = sphi %s675_s17, %s863_s17   ;;  %s628_s16 = sphi %s673_s16, %s862_s16   ;;  %s624_s15 = sphi %s671_s15, %s861_s15   ;;  %s620_s14 = sphi %s669_s14, %s860_s14   ;;  %s616_s13 = sphi %s667_s13, %s859_s13   ;;  %s612_s12 = sphi %s665_s12, %s858_s12  }
   0x8   : > { %s29_s22 = sadd.s32 1, %s632_s17  ;;  %s32_s23 = sadd.s32 1, %s636_s18 }
   0x9   : > { %p30_p0 = scmp.ge.s32.totalorder %s29_s22, 2  ;;  %p105_p1 = scmp.ne.s32.totalorder %s620_s14, %s616_s13 }
   0xa   : > { %p106_p2 = scmp.eq.s32.totalorder %s418_s20, 11  ;;  %p111_p4 = scmp.ne.s32.totalorder %s616_s13, %s612_s12 }
   0xb   : > { %s866_s22 = smov (%p30_p0, %s29_s22), 0  ;;  %s868_s23 = smov (!%p30_p0, %s32_s23), %s636_s18 }
   0xc   : > { %p714_p3 = por %p106_p2, %p105_p1  ;;  %p34_p5 = scmp.ge.s32.totalorder %s868_s23, 6 }
   0xd   : > { %p112_p6 = scmp.eq.s32.totalorder %s419_s21, 11  ;;  %p422_p7 = scmp.ge.s32.totalorder %s640_s19, 1 }
   0xe   : > { %p178_p8 = scmp.lt.s32.totalorder %s640_s19, 13  ;;  %s870_s23 = smov (%p34_p5, %s868_s23), 0 }
   0xf   : > { %855 = sst [smem:[#allocation8_spill]] %s870_s23  ;;  %p724_p9 = por %p112_p6, %p111_p4 }
  0x10   : > { %p179_p10 = pnand %p422_p7, %p178_p8  ;;  %s92_s26 = ssub.s32 %s636_s18, %s870_s23 }
  0x11   : > { %s95_s27 = sadd.s32 1, %s620_s14  ;;  %p93_p11 = scmp.eq.s32.totalorder %s92_s26, 0 }
  0x12   : > { %182 = sbr.rel (%p179_p10) target bundleno = 83 (0x53), region = 28  ;;  %s735_s29 = sand.u32 (!%p179_p10), 1, %s616_s13  }
  0x13   : > { %s732_s28 = scalar_select %p93_p11, %s620_s14, %s95_s27  }
  0x14   : > { %p218_p12 = scmp.lt.s32.totalorder (!%p179_p10), %s628_s16, 5  ;;  %s423_s30 = sshll.u32 (!%p179_p10), %s735_s29, 3 }
  0x15   : > { %p220_p13 = scmp.lt.s32.totalorder (!%p179_p10), %s624_s15, 1  ;;  %s748_s27 = scalar_lea.vmem (!%p179_p10), [#allocation2], %s423_s30 }
  0x16   : > { %s750_s23 = scalar_lea.vmem (!%p179_p10), [#allocation4], %s423_s30  ;;  %p429_p0 = scmp.ne.s32.totalorder (!%p179_p10), %s624_s15, 0 }
  0x19   : > { %s219_s4 = scalar_select %p218_p12, %s628_s16, 5 }
  0x1a   : > { %s221_s5 = scalar_select %p220_p13, %s624_s15, 1 }
  0x1b   : > { %s425_s6 = sshll.u32 %s219_s4, 1  ;;  %237 = sbr.rel (%p429_p0) target bundleno = 34 (0x22), region = 32  ;;  %v642_v0 = vmov (!%p429_p0), 0.0  }
  0x1c   : > { %s223_s7 = sadd.s32 %s425_s6, %s221_s5  ;;  %238 = vst [vmem:[%s748_s27] sm:$0xff] (!%p429_p0), %v642_v0  ;;  %239 = vst [vmem:[%s750_s23] sm:$0xff] (!%p429_p0), %v642_v0 }
  0x1d   : > { %s426_s8 = sshll.u32 %s223_s7, 3 }
  0x1e   : > { %s225_s11 = scalar_lea.vmem %s849_s0, %s426_s8  ;;  %s233_s26 = scalar_lea.vmem %s850_s1, %s426_s8 }
  0x22 PF: > { %s430_s4 = sshll.u32 %s624_s15, 3  ;;  %v244_v1 = vlaneseq  ;;  %v240_v2 = vld [vmem:[%s225_s11] sm:$0xff]  ;;  %s433_s30 = sshll.u32 %s628_s16, 7 }
  0x23   : > { %s243_s5 = ssub.s32 10, %s430_s4  ;;  %v241_v3 = vld [vmem:[%s233_s26] sm:$0xff]  ;;  %v255_v9 = vld [vmem:[%s750_s23] sm:$0xff]  ;;  %s279_s6 = sshll.u32 %s748_s27, 4  ;;  %s766_s6 = int_to_ptr.vmem [resolvable:$true] %s279_s6 }
  0x24   : > { %v245_v4 = vshrl.u32 %v244_v1, 7  ;;  %v246_v5 = vstv %s243_s5  ;;  %v250_v8 = vld [vmem:[%s748_s27] sm:$0xff]  ;;  %s292_s15 = sshll.u32 %s750_s23, 4  ;;  %s764_s9 = scalar_lea.hbm %s851_s2, %s433_s30  ;;  %s773_s15 = int_to_ptr.vmem [resolvable:$true] %s292_s15 }
  0x25   : > { %s771_s11 = scalar_lea.hbm %s852_s3, %s433_s30  ;;  %s261_s20 = scalar_lea.sflag [#allocation3], %s735_s29 }
  0x26   : > { %vm247_vm0 = vcmp.lt.s32.totalorder %v245_v4, %v246_v5  ;;  %s514_s21 = scalar_lea.vmem %s766_s6, 128  ;;  %s643_s26 = smov [#allocation2]  }
  0x27   : > { %v248_v6 = vsel %vm247_vm0, %v240_v2, 0.0  ;;  %v249_v7 = vsel %vm247_vm0, %v241_v3, 0.0  ;;  %p515_p1 = scmp.ne.s32.totalorder %s766_s6, %s514_s21  ;;  %s518_s4 = sshll.u32 %s643_s26, 4  ;;  %s519_s4 = int_to_ptr.vmem [resolvable:$false] %s518_s4 }
  0x28   : > { %v251_v10 = vmul.f32 %v249_v7, %v248_v6  ;;  %v256_v11 = vadd.f32 %v249_v7, %v248_v6  ;;  %s520_s5 = scalar_lea.vmem %s519_s4, 256  ;;  %p521_p5 = scmp.lt.s32.totalorder %s766_s6, %s519_s4 }
  0x29   : > { %p516_p2 = pnand %p515_p1, %p714_p3  ;;  %p522_p6 = scmp.lt.s32.totalorder %s520_s5, %s514_s21 }
  0x2a   : > { %v253_v12 = vadd.f32 %v251_v10, %v250_v8  ;;  %v258_v13 = vadd.f32 %v256_v11, %v255_v9 }
  0x2b   : > { %p517_p4 = pneg %p516_p2  ;;  %p523_p7 = por %p522_p6, %p521_p5 }
  0x2c   : > { %254 = vst [vmem:[%s748_s27] sm:$0xff] %v253_v12  ;;  %259 = vst [vmem:[%s750_s23] sm:$0xff] %v258_v13 }
  0x2d   : > { %p524_p8 = pnand %p523_p7, %p517_p4 }
  0x2f   : > { %527 = shalt.err (!%p524_p8)
}
  0x30   : > { %s528_s23 = scalar_lea.hbm %s764_s9, 128  ;;  %s532_s7 = scalar_lea.hbm %s851_s2, 768 }
  0x31   : > { %p529_p10 = scmp.ne.s32.totalorder %s764_s9, %s528_s23  ;;  %p533_p13 = scmp.lt.u32.totalorder %s764_s9, %s851_s2 }
  0x32   : > { %p534_p0 = scmp.lt.u32.totalorder %s532_s7, %s528_s23  ;;  %p536_p2 = scmp.lt.u32.totalorder %s528_s23, %s764_s9 }
  0x33   : > { %p530_p11 = pnand %p529_p10, %p714_p3 }
  0x34   : > { %p535_p1 = por %p534_p0, %p533_p13 }
  0x35   : > { %p531_p12 = pneg %p530_p11 }
  0x36   : > { %p537_p4 = por %p536_p2, %p535_p1 }
  0x38   : > { %p538_p5 = pnand %p537_p4, %p531_p12 }
  0x3a   : > { %541 = shalt.err (!%p538_p5)
}
  0x3b   : > { %437 = dma.vmem_to_hbm [thread:$0]  (%p714_p3), %s766_s6, 128, %s764_s9, %s261_s20  }
  0x3c   : > { %s266_s10 = scalar_lea.sflag [#allocation5], %s735_s29  ;;  %s542_s21 = scalar_lea.vmem %s773_s15, 128 }
  0x3d   : > { %p543_p6 = scmp.ne.s32.totalorder %s773_s15, %s542_s21  ;;  %s644_s26 = smov [#allocation4]  }
  0x3e   : > { %s546_s4 = sshll.u32 %s644_s26, 4  ;;  %s547_s4 = int_to_ptr.vmem [resolvable:$false] %s546_s4 }
  0x3f   : > { %p544_p7 = pnand %p543_p6, %p714_p3  ;;  %s548_s5 = scalar_lea.vmem %s547_s4, 256 }
  0x40   : > { %p549_p10 = scmp.lt.s32.totalorder %s773_s15, %s547_s4  ;;  %p550_p11 = scmp.lt.s32.totalorder %s548_s5, %s542_s21 }
  0x41   : > { %p545_p8 = pneg %p544_p7 }
  0x42   : > { %p551_p12 = por %p550_p11, %p549_p10 }
  0x44   : > { %p552_p13 = pnand %p551_p12, %p545_p8 }
  0x46   : > { %555 = shalt.err (!%p552_p13)
}
  0x47   : > { %s556_s29 = scalar_lea.hbm %s771_s11, 128  ;;  %s560_s20 = scalar_lea.hbm %s852_s3, 768 }
  0x48   : > { %p557_p0 = scmp.ne.s32.totalorder %s771_s11, %s556_s29  ;;  %p561_p4 = scmp.lt.u32.totalorder %s771_s11, %s852_s3 }
  0x49   : > { %p562_p5 = scmp.lt.u32.totalorder %s560_s20, %s556_s29  ;;  %p564_p7 = scmp.lt.u32.totalorder %s556_s29, %s771_s11 }
  0x4a   : > { %p558_p1 = pnand %p557_p0, %p714_p3 }
  0x4b   : > { %p563_p6 = por %p562_p5, %p561_p4 }
  0x4c   : > { %p559_p2 = pneg %p558_p1 }
  0x4d   : > { %p565_p8 = por %p564_p7, %p563_p6 }
  0x4f   : > { %p566_p10 = pnand %p565_p8, %p559_p2 }
  0x51   : > { %569 = shalt.err (!%p566_p10)
}
  0x52   : > { %438 = dma.vmem_to_hbm [thread:$0]  (%p714_p3), %s773_s15, 128, %s771_s11, %s266_s10  }
  0x53 PF: > { %p448_p11 = scmp.ge.s32.totalorder %s640_s19, 2  ;;  %s304_s30 = sand.u32 1, %s612_s12  }
  0x54   : > { %s305_s7 = scalar_lea.sflag [#allocation3], %s304_s30 }
  0x55   : > { %p442_p12 = pnand %p448_p11, %p724_p9 }
  0x57   : > { %603 = dma.done.wait (!%p442_p12), %s305_s7, 128  }
  0x58   : > { %605 = vsyncadd (!%p442_p12), %s305_s7, 4294967168  ;;  %s314_s8 = scalar_lea.sflag [#allocation5], %s304_s30 }
  0x59   : > { %607 = dma.done.wait (!%p442_p12), %s314_s8, 128  }
  0x5a   : > { %609 = vsyncadd (!%p442_p12), %s314_s8, 4294967168  ;;  %s20_s19 = sadd.s32 1, %s640_s19   ;;  %s857_s24 = sld [smem:[#allocation8_spill]] }
  0x5b   : > { %p17_p13 = scmp.ge.s32.totalorder %s20_s19, 14   ;;  %s858_s12 = smov %s616_s13 }
  0x5c   : > { %s859_s13 = smov %s620_s14  ;;  %s860_s14 = smov %s732_s28 }
  0x5d   : > { %s861_s15 = smov %s632_s17  ;;  %s862_s16 = smov %s636_s18 }
  0x5e   : > { %s863_s17 = smov %s866_s22  ;;  %19 = sbr.rel (!%p17_p13) target bundleno = 7 (0x7), region = 87 }
  0x60   : > { %s864_s18 = smov %s857_s24 }
  0x65   :  { %319 = vsyncpa [#allocation3], 1 }
  0x66   :  { %321 = vsyncpa [#allocation3 + $0x1], 1 }
  0x67   :  { %322 = vsyncpa [#allocation5], 1 }
  0x68   :  { %324 = vsyncpa [#allocation5 + $0x1], 1 }

</bundles_post_ra>
